<compile_context>
chip_gen: v5e
topology: v5e:2x2
jax: 0.10.0
libtpu: 0.0.40
codegen_flags: <defaults>
</compile_context>

<pallas_src>
import jax
import jax.numpy as jnp
from jax.experimental import pallas as pl
from jax.experimental.pallas import tpu as pltpu


def _softplus(x):
    # Numerically stable softplus: max(x, 0) + log1p(exp(-|x|)).
    return jnp.maximum(x, 0.0) + jnp.log1p(jnp.exp(-jnp.abs(x)))


def _actnorm_affine_kernel(x_ref, scale_ref, shift_ref, y_ref):
    """Streaming kernel: y = softplus(scale) * x + shift.

    x_ref:     (TN, CHW) f32 tile of the flattened activations
    scale_ref: (1, CHW)  f32 raw (pre-softplus) scale parameter (VMEM-resident)
    shift_ref: (1, CHW)  f32 shift parameter (VMEM-resident)
    y_ref:     (TN, CHW) f32 output tile
    """
    sp = _softplus(scale_ref[...])                                   # (1, CHW)
    y_ref[...] = (sp * x_ref[...] + shift_ref[...]).astype(y_ref.dtype)


def _actnorm_logdet_kernel(scale_ref, logdet_ref):
    """Param-only kernel: log_det = sum(log(softplus(scale))).

    scale_ref:  (1, CHW) f32 raw scale parameter
    logdet_ref: (1,)     f32 scalar output in SMEM
    """
    sp = _softplus(scale_ref[...])                                   # (1, CHW)
    # NOTE: log(softplus(scale)) underflows to -inf for strongly negative raw
    # scale, matching the PyTorch reference semantics exactly.
    logdet_ref[0] = jnp.sum(jnp.log(sp))


def _choose_tile_rows(n_rows, chw, bytes_per_elem=4):
    """Pick TN so a (TN, CHW) tile is ~2 MiB (cap ~3 MiB).

    With 2-deep double buffering of the x input and y output (~4 live tiles)
    this keeps the pipeline budget under ~12 MiB: fits v5e's 16 MiB scoped
    VMEM default and v7x's 64 MiB physical VMEM without raising limits.
    """
    row_bytes = max(1, chw * bytes_per_elem)
    target_bytes = 2 * 1024 * 1024
    cap_bytes = 3 * 1024 * 1024
    tn = max(1, min(target_bytes // row_bytes, cap_bytes // row_bytes))
    if tn >= 8:
        tn = (tn // 8) * 8  # full 8-sublane vreg occupancy at production sizes
    return int(min(n_rows, tn))


def actnorm_forward(x_nchw, scale_chw, shift_chw):
    """ActNorm.forward(x, reverse=False, init=False) -> (y, log_det).

    x_nchw:     (N, C, H, W) f32
    scale_chw:  (C, H, W)    f32  (raw parameter; softplus applied in-kernel)
    shift_chw:  (C, H, W)    f32
    """
    N, C, H, W = x_nchw.shape
    CHW = C * H * W

    # Free metadata reshapes to a lane-dense 2-D layout (last dim = CHW).
    x2 = x_nchw.reshape(N, CHW)
    scale2 = scale_chw.reshape(1, CHW)
    shift2 = shift_chw.reshape(1, CHW)

    tn = _choose_tile_rows(N, CHW)
    grid = (pl.cdiv(N, tn),)

    # ---- streaming affine kernel: y = softplus(scale) * x + shift ----------
    y2 = pl.pallas_call(
        _actnorm_affine_kernel,
        out_shape=jax.ShapeDtypeStruct((N, CHW), jnp.float32),
        grid=grid,
        in_specs=[
            pl.BlockSpec((tn, CHW), lambda i: (i, 0)),   # x tile streams over N
            pl.BlockSpec((1, CHW), lambda i: (0, 0)),    # scale: VMEM-resident
            pl.BlockSpec((1, CHW), lambda i: (0, 0)),    # shift: VMEM-resident
        ],
        out_specs=pl.BlockSpec((tn, CHW), lambda i: (i, 0)),
        compiler_params=pltpu.CompilerParams(
            dimension_semantics=("parallel",)),          # v7x: shard over 2 TCs
        cost_estimate=pl.CostEstimate(
            flops=2 * N * CHW,                 # mul + add per element
            transcendentals=2 * CHW * grid[0], # softplus (exp + log1p) on params
            bytes_accessed=(2 * N * CHW + 2 * CHW) * 4,
        ),
    )(x2, scale2, shift2)

    # ---- tiny param-only kernel: log_det = sum(log(softplus(scale))) -------
    logdet = pl.pallas_call(
        _actnorm_logdet_kernel,
        out_shape=jax.ShapeDtypeStruct((1,), jnp.float32),
        grid=(1,),
        in_specs=[pl.BlockSpec((1, CHW), lambda i: (0, 0))],
        out_specs=pl.BlockSpec(memory_space=pltpu.MemorySpace.SMEM),
        cost_estimate=pl.CostEstimate(
            flops=CHW,
            transcendentals=3 * CHW,           # exp, log1p, log
            bytes_accessed=CHW * 4 + 4,
        ),
    )(scale2)

    return y2.reshape(N, C, H, W), logdet[0]


def actnorm_forward_ref(x_nchw, scale_chw, shift_chw):
    """Pure-JAX reference matching the PyTorch forward (reverse=False)."""
    sp = jax.nn.softplus(scale_chw)
    y = sp * x_nchw + shift_chw
    log_det = jnp.sum(jnp.log(sp))
    return y, log_det


if __name__ == "__main__":
    # Small shapes consistent with ActNorm(in_channels=4, image_size=16).
    N, C, S = 2, 4, 16

    key = jax.random.PRNGKey(0)
    kx, ks, kb = jax.random.split(key, 3)

    x = jax.random.normal(kx, (N, C, S, S), jnp.float32)
    # Non-trivial parameters (default init would be ones/zeros).
    scale = 1.0 + 0.5 * jax.random.normal(ks, (C, S, S), jnp.float32)
    shift = 0.1 * jax.random.normal(kb, (C, S, S), jnp.float32)

    y, log_det = actnorm_forward(x, scale, shift)
    y = jax.block_until_ready(y)
    log_det = jax.block_until_ready(log_det)

    y_ref, ld_ref = actnorm_forward_ref(x, scale, shift)
    y_ref = jax.block_until_ready(y_ref)

    assert y.shape == (N, C, S, S), y.shape
    assert jnp.allclose(y, y_ref, atol=1e-5, rtol=1e-5), \
        float(jnp.max(jnp.abs(y - y_ref)))
    assert jnp.allclose(log_det, ld_ref, atol=1e-3, rtol=1e-5), \
        (float(log_det), float(ld_ref))

    print("KERNEL_OK")
</pallas_src>

<mosaic_0001>
module attributes {stable_mosaic.version = 11 : i64} {
  func.func @_actnorm_affine_kernel(%arg0: i32, %arg1: memref<2x1024xf32, #tpu.memory_space<vmem>>, %arg2: memref<1x1024xf32, #tpu.memory_space<vmem>>, %arg3: memref<1x1024xf32, #tpu.memory_space<vmem>>, %arg4: memref<2x1024xf32, #tpu.memory_space<vmem>>) attributes {dimension_semantics = [#tpu.dimension_semantics<parallel>], iteration_bounds = array<i64: 1>, scalar_prefetch = 0 : i64, scratch_operands = 0 : i64, tpu.core_type = #tpu.core_type<tc>, window_params = [{transform_indices = @transform_0, window_bounds = array<i64: 2, 1024>}, {pipeline_mode = #tpu.pipeline_mode<synchronous>, transform_indices = @transform_1, window_bounds = array<i64: 1, 1024>}, {pipeline_mode = #tpu.pipeline_mode<synchronous>, transform_indices = @transform_2, window_bounds = array<i64: 1, 1024>}, {transform_indices = @transform_3, window_bounds = array<i64: 2, 1024>}]} {
    %c0 = arith.constant 0 : index
    %c0_0 = arith.constant 0 : index
    %0 = vector.load %arg2[%c0, %c0_0] : memref<1x1024xf32, #tpu.memory_space<vmem>>, vector<1x1024xf32>
    %cst = arith.constant 0.000000e+00 : f32
    %1 = vector.broadcast %cst : f32 to vector<1x1024xf32>
    %2 = arith.maximumf %0, %1 : vector<1x1024xf32>
    %3 = math.absf %0 : vector<1x1024xf32>
    %cst_1 = arith.constant 0.000000e+00 : f32
    %4 = vector.broadcast %cst_1 : f32 to vector<1x1024xf32>
    %5 = arith.subf %4, %3 : vector<1x1024xf32>
    %6 = math.exp %5 : vector<1x1024xf32>
    %7 = math.log1p %6 : vector<1x1024xf32>
    %8 = arith.addf %2, %7 : vector<1x1024xf32>
    %c0_2 = arith.constant 0 : index
    %c0_3 = arith.constant 0 : index
    %9 = vector.load %arg1[%c0_2, %c0_3] : memref<2x1024xf32, #tpu.memory_space<vmem>>, vector<2x1024xf32>
    %10 = vector.broadcast %8 : vector<1x1024xf32> to vector<2x1024xf32>
    %11 = arith.mulf %10, %9 : vector<2x1024xf32>
    %c0_4 = arith.constant 0 : index
    %c0_5 = arith.constant 0 : index
    %12 = vector.load %arg3[%c0_4, %c0_5] : memref<1x1024xf32, #tpu.memory_space<vmem>>, vector<1x1024xf32>
    %13 = vector.broadcast %12 : vector<1x1024xf32> to vector<2x1024xf32>
    %14 = arith.addf %11, %13 : vector<2x1024xf32>
    %c0_6 = arith.constant 0 : index
    %c0_7 = arith.constant 0 : index
    %15 = vector.load %arg4[%c0_6, %c0_7] : memref<2x1024xf32, #tpu.memory_space<vmem>>, vector<2x1024xf32>
    tpu.vector_store %arg4[%c0_6, %c0_7], %14 {strides = array<i32>} : memref<2x1024xf32, #tpu.memory_space<vmem>>, vector<2x1024xf32>,
    return
  }
  func.func @transform_0(%arg0: i32) -> (i32, i32) {
    %c0_i32 = arith.constant 0 : i32
    %c0_i32_0 = arith.constant 0 : i32
    return %arg0, %c0_i32 : i32, i32
  }
  func.func @transform_1(%arg0: i32) -> (i32, i32) {
    %c0_i32 = arith.constant 0 : i32
    %c0_i32_0 = arith.constant 0 : i32
    %c0_i32_1 = arith.constant 0 : i32
    return %c0_i32, %c0_i32_0 : i32, i32
  }
  func.func @transform_2(%arg0: i32) -> (i32, i32) {
    %c0_i32 = arith.constant 0 : i32
    %c0_i32_0 = arith.constant 0 : i32
    %c0_i32_1 = arith.constant 0 : i32
    return %c0_i32, %c0_i32_0 : i32, i32
  }
  func.func @transform_3(%arg0: i32) -> (i32, i32) {
    %c0_i32 = arith.constant 0 : i32
    %c0_i32_0 = arith.constant 0 : i32
    return %arg0, %c0_i32 : i32, i32
  }
}

</mosaic_0001>

<bundles_post_ra>
// kernel: tpu_custom_call.1
= control target key start
LH: loop header
LB: loop body
LE: loop exit
PB: predicated region body
PF: predicated region fallthrough
CT: control target
= control target key end

     0   :  { %8 = vsyncpa [#allocation3], 0  ;;  %s349_s0 = inlined_call_operand.hbm [shape: f32[2,1024], index: 0, kind: input, shape index: {}]   ;;  %s350_s1 = inlined_call_operand.hbm [shape: f32[1,1024], index: 1, kind: input, shape index: {}]   ;;  %s351_s2 = inlined_call_operand.hbm [shape: f32[1,1024], index: 2, kind: input, shape index: {}]   ;;  %s352_s3 = inlined_call_operand.hbm [shape: f32[2,1024], index: 3, kind: output, shape index: {}]  }
   0x1   :  { %9 = vsyncpa [#allocation6], 0  ;;  %s27_s14 = sshll.u32 %s350_s1, 4  ;;  %s28_s14 = int_to_ptr.hbm [resolvable:$true] %s27_s14 }
   0x2   :  { %10 = vsyncpa [#allocation4], 0  ;;  %s301_s15 = smov [#allocation5]   ;;  %s16_s19 = sshll.u32 %s349_s0, 4  ;;  %s17_s19 = int_to_ptr.hbm [resolvable:$true] %s16_s19 }
   0x3   :  { %s29_s16 = sshll.u32 %s301_s15, 4  ;;  %s302_s20 = smov [#allocation2]   ;;  %s30_s16 = int_to_ptr.vmem [resolvable:$true] %s29_s16 }
   0x4   :  { %32 = dma.hbm_to_vmem [thread:$0]  %s28_s14, 128, %s30_s16, [#allocation6]  }
   0x5   :  { %s18_s21 = sshll.u32 %s302_s20, 4  ;;  %s38_s24 = sshll.u32 %s351_s2, 4  ;;  %s19_s21 = int_to_ptr.vmem [resolvable:$true] %s18_s21  ;;  %s39_s24 = int_to_ptr.hbm [resolvable:$true] %s38_s24 }
   0x6   :  { %21 = dma.hbm_to_vmem [thread:$0]  %s17_s19, 256, %s19_s21, [#allocation3]  }
   0x7   :  { %s303_s1 = smov [#allocation7]  }
   0x8   :  { %s40_s25 = sshll.u32 %s303_s1, 4  ;;  %s41_s25 = int_to_ptr.vmem [resolvable:$true] %s40_s25 }
   0x9   :  { %43 = dma.hbm_to_vmem [thread:$0]  %s39_s24, 128, %s41_s25, [#allocation6]  }
   0xa   :  { %295 = dma.done.wait [#allocation3], 256  }
   0xb   :  { %296 = vsyncadd [#allocation3], 4294967040 }
   0xc   :  { %297 = dma.done.wait [#allocation6], 256  }
   0xd   :  { %298 = vsyncadd [#allocation6], 4294967040  ;;  %v72_v0 = vld [vmem:[#allocation2] sm:$0xff]  ;;  %v73_v1 = vld [vmem:[#allocation2 + $0x8] sm:$0xff]  ;;  %vm160_vm1 = vcmask 1041408   ;;  %vm162_vm2 = vcmask 1045508  }
   0xe   :  { %v56_v2 = vld [vmem:[#allocation5] sm:$0xff]  ;;  %93 = vst [vmem:[#allocation1] ss:$4 sm:$0xff] %v72_v0  ;;  %v120_v11 = vld [vmem:[#allocation7] sm:$0xff]  ;;  %vm164_vm3 = vcmask 1043456   ;;  %s304_s0 = smov [#allocation8]  }
   0xf   :  { %v58_v3 = vand.u32 2147483647, %v56_v2  ;;  %95 = vst [vmem:[#allocation1 + $0x20] ss:$4 sm:$0xff] %v73_v1  ;;  %v57_v14 = vmax.f32 %v56_v2, 0.0  ;;  %v122_v16 = vperm.slane %v120_v11, 0 }
  0x10   :  { %v123_v18 = vperm.slane %v120_v11, 1  ;;  %v124_v19 = vperm.slane %v120_v11, 2  ;;  %v125_v20 = vperm.slane %v120_v11, 3  ;;  %v126_v21 = vperm.slane %v120_v11, 4  ;;  %s178_s2 = sshll.u32 %s304_s0, 4  ;;  %s180_s28 = sshll.u32 %s352_s3, 4  ;;  %s179_s2 = int_to_ptr.vmem [resolvable:$true] %s178_s2  ;;  %s181_s28 = int_to_ptr.hbm [resolvable:$true] %s180_s28 }
  0x11   :  { %v59_v4 = vsub.f32 0.0, %v58_v3  ;;  %v127_v22 = vperm.slane %v120_v11, 5  ;;  %v128_v23 = vperm.slane %v120_v11, 6  ;;  %v129_v24 = vperm.slane %v120_v11, 7 }
  0x13   :  { %v60_v5 = vmul.f32 1.442695, %v59_v4 }
  0x15   :  { %195 = vpow2.f32 %v60_v5  ;;  %v96_v26 = vld.sshfl [vmem:[#allocation1] sm:$0xff pattern:$0x73625140]  ;;  %v97_v27 = vld.sshfl [vmem:[#allocation1 + $0x8] sm:$0xff pattern:$0x73625140] }
  0x16   :  { %v98_v28 = vld.sshfl [vmem:[#allocation1 + $0x10] sm:$0xff pattern:$0x73625140]  ;;  %v99_v29 = vld.sshfl [vmem:[#allocation1 + $0x18] sm:$0xff pattern:$0x73625140] }
  0x17   :  { %v100_v31 = vld.sshfl [vmem:[#allocation1 + $0x20] sm:$0xff pattern:$0x73625140]  ;;  %v101_v32 = vld.sshfl [vmem:[#allocation1 + $0x28] sm:$0xff pattern:$0x73625140] }
  0x18   :  { %v102_v33 = vld.sshfl [vmem:[#allocation1 + $0x30] sm:$0xff pattern:$0x73625140]  ;;  %v103_v34 = vld.sshfl [vmem:[#allocation1 + $0x38] sm:$0xff pattern:$0x73625140] }
  0x1b   :  { %v196_v6 = vpop.eup %195 }
  0x1c   :  { %v62_v7 = vadd.f32 1.0, %v196_v6  ;;  %v65_v8 = vmul.f32 -0.5, %v196_v6  ;;  %v68_v10 = vand.u32 2147483647, %v196_v6 }
  0x1e   :  { %197 = vlog2.f32 %v62_v7  ;;  %v66_v9 = vadd.f32 1.0, %v65_v8  ;;  %vm334_vm0 = vcmp.lt.f32.partialorder %v68_v10, 0.0004427343 }
  0x20   :  { %v67_v12 = vmul.f32 %v196_v6, %v66_v9 }
  0x24   :  { %v198_v13 = vpop.eup %197 }
  0x25   :  { %v64_v17 = vmul.f32 0.6931472, %v198_v13 }
  0x27   :  { %v70_v25 = vsel %vm334_vm0, %v67_v12, %v64_v17 }
  0x28   :  { %v71_v30 = vadd.f32 %v70_v25, %v57_v14 }
  0x2a   :  { %v75_v35 = vperm.slane %v71_v30, 0  ;;  %v76_v36 = vperm.slane %v71_v30, 1  ;;  %v77_v37 = vperm.slane %v71_v30, 2  ;;  %v78_v38 = vperm.slane %v71_v30, 3 }
  0x2b   :  { %v79_v39 = vperm.slane %v71_v30, 4  ;;  %v80_v40 = vperm.slane %v71_v30, 5  ;;  %v81_v41 = vperm.slane %v71_v30, 6  ;;  %v82_v42 = vperm.slane %v71_v30, 7 }
  0x2c   :  { %v112_v43 = vmul.f32 %v96_v26, %v75_v35  ;;  %v113_v44 = vmul.f32 %v97_v27, %v76_v36  ;;  %v114_v45 = vmul.f32 %v98_v28, %v77_v37  ;;  %v115_v46 = vmul.f32 %v99_v29, %v78_v38 }
  0x2d   :  { %v116_v47 = vmul.f32 %v100_v31, %v79_v39  ;;  %v117_v48 = vmul.f32 %v101_v32, %v80_v40  ;;  %v118_v49 = vmul.f32 %v102_v33, %v81_v41  ;;  %v119_v50 = vmul.f32 %v103_v34, %v82_v42 }
  0x2e   :  { %v139_v51 = vadd.f32 %v123_v18, %v113_v44  ;;  %v140_v52 = vadd.f32 %v124_v19, %v114_v45  ;;  %v141_v53 = vadd.f32 %v125_v20, %v115_v46  ;;  %v138_v57 = vadd.f32 %v122_v16, %v112_v43 }
  0x2f   :  { %v143_v54 = vadd.f32 %v127_v22, %v117_v48  ;;  %v144_v55 = vadd.f32 %v128_v23, %v118_v49  ;;  %v145_v56 = vadd.f32 %v129_v24, %v119_v50  ;;  %v142_v61 = vadd.f32 %v126_v21, %v116_v47 }
  0x30   :  { %v154_v58 = vrot.slane %v139_v51, 6  ;;  %v155_v59 = vrot.slane %v140_v52, 4  ;;  %v156_v60 = vrot.slane %v141_v53, 2 }
  0x31   :  { %v157_v62 = vrot.slane %v143_v54, 6  ;;  %v158_v63 = vrot.slane %v144_v55, 4  ;;  %v159_v0 = vrot.slane %v145_v56, 2 }
  0x32   :  { %v161_v1 = vsel %vm160_vm1, %v138_v57, %v154_v58  ;;  %v163_v2 = vsel %vm162_vm2, %v155_v59, %v156_v60 }
  0x33   :  { %v165_v3 = vsel %vm164_vm3, %v161_v1, %v163_v2  ;;  %v166_v4 = vsel %vm160_vm1, %v142_v61, %v157_v62  ;;  %v167_v5 = vsel %vm162_vm2, %v158_v63, %v159_v0 }
  0x34   :  { %171 = vst [vmem:[#allocation8] sm:$0xff] %v165_v3  ;;  %v168_v6 = vsel %vm164_vm3, %v166_v4, %v167_v5 }
  0x35   :  { %172 = vst [vmem:[#allocation8 + $0x8] sm:$0xff] %v168_v6 }
  0x36   :  { %183 = dma.vmem_to_hbm [thread:$0]  %s179_s2, 256, %s181_s28, [#allocation4]  }
  0x37   :  { %299 = dma.done.wait [#allocation4], 256  }
  0x38   :  { %300 = vsyncadd [#allocation4], 4294967040 }
  0x39   :  { %188 = vsyncpa [#allocation3], 1 }
  0x3a   :  { %189 = vsyncpa [#allocation6], 1 }
  0x3b   :  { %190 = vsyncpa [#allocation4], 1 }

</bundles_post_ra>
